<compile_context>
chip_gen: v7x
topology: tpu7x:2x2x1
jax: 0.10.0
libtpu: 0.0.40
codegen_flags: <defaults>
</compile_context>

<pallas_src>
import functools

import numpy as np
import jax
import jax.numpy as jnp
from jax import lax
from jax.experimental import pallas as pl
from jax.experimental.pallas import tpu as pltpu


def _round_up(x: int, m: int) -> int:
    return -(-x // m) * m


def _cdiv(a: int, b: int) -> int:
    return -(-a // b)


# ---------------------------------------------------------------------------
# Parameter setup (mirrors CPInferenceMultiRegion.__init__ / _conformal_quantile)
# ---------------------------------------------------------------------------
def conformal_quantile(scores: np.ndarray, quantile: float) -> np.float32:
    """qhat = quantile(scores, min(ceil((n+1)*q)/n, 1), interpolation='higher')."""
    n = scores.shape[0]
    q = np.ceil((n + 1) * quantile) / n
    q = min(float(q), 1.0)
    return np.float32(np.quantile(scores.astype(np.float64), q, method="higher"))


def build_params(conformity_scores_list, leaf_values, quantile):
    if quantile > 1 or quantile < 0:
        raise Exception("quantile must be a real value in [0,1].")
    error_pval = np.array(
        [conformal_quantile(np.asarray(s, np.float32), quantile)
         for s in conformity_scores_list],
        dtype=np.float32,
    )[:, None]                                          # (n_regions, 1)
    leaf_values = np.asarray(leaf_values, np.float32)   # (n_regions,)
    return jnp.asarray(error_pval), jnp.asarray(leaf_values)


# ---------------------------------------------------------------------------
# Pallas kernel: nearest-leaf membership + interval construction
#   leaf_ref, err_ref   : (R,) f32 in SMEM (scalar prefetch)
#   region_ref, base_ref: (TS, 128) dense batch tiles (original dtype, cast in-kernel)
#   lower_ref, upper_ref: (TS, 128) dense outputs
# ---------------------------------------------------------------------------
def _cp_kernel(leaf_ref, err_ref, region_ref, base_ref, lower_ref, upper_ref,
               *, n_regions):
    region = region_ref[...].astype(jnp.float32)     # (TS, 128)
    base = base_ref[...].astype(jnp.float32)         # (TS, 128)

    def leaf_distance(leaf_j):
        d = jnp.abs(region - leaf_j)
        # torch.argmin treats NaN as the minimum (first NaN wins): map NaN -> -inf so it
        # always beats finite distances and ties break to the first occurrence.
        return jnp.where(jnp.isnan(d), -jnp.inf, d)

    # Initialize with region 0 (exact first-occurrence argmin, also handles all-inf rows).
    best_d = leaf_distance(leaf_ref[0])
    best_err = jnp.broadcast_to(err_ref[0], region.shape).astype(jnp.float32)

    def step(leaf_j, err_j, best_d, best_err):
        dj = leaf_distance(leaf_j)
        take = dj < best_d                            # strict: first occurrence wins ties
        best_err = jnp.where(take, err_j, best_err)
        best_d = jnp.where(take, dj, best_d)
        return best_d, best_err

    if n_regions <= 16:
        # Tiny static unroll (typical case).
        for j in range(1, n_regions):
            best_d, best_err = step(leaf_ref[j], err_ref[j], best_d, best_err)
    else:
        def body(j, carry):
            bd, be = carry
            return step(leaf_ref[j], err_ref[j], bd, be)
        best_d, best_err = lax.fori_loop(1, n_regions, body, (best_d, best_err))

    lower_ref[...] = (base - best_err).astype(lower_ref.dtype)
    upper_ref[...] = (base + best_err).astype(upper_ref.dtype)


def _choose_tiling(batch: int, max_rows_per_tile: int = 512):
    """Pick a (TS, 128) tiling: TS multiple of 8, small over-padding, >=2 grid steps when possible."""
    b_vreg = _round_up(max(batch, 1), 1024)           # whole (8,128) vregs
    rows = b_vreg // 128                              # multiple of 8
    max_steps = rows // 8
    n_steps = min(max(2, _cdiv(rows, max_rows_per_tile)), max_steps)
    ts = _round_up(_cdiv(rows, n_steps), 8)
    rows_pad = ts * n_steps
    return ts, rows_pad, n_steps


def cp_inference_multi_region(x_orig, base_prediction, region_prediction,
                              leaf_values, error_pval, *, max_rows_per_tile=512):
    """Returns (x_orig, base_prediction, region_prediction, lower, upper)."""
    B = int(np.prod(base_prediction.shape))
    R = int(leaf_values.shape[0])
    if R < 1:
        raise ValueError("leaf_values must contain at least one region.")
    out_dtype = jnp.promote_types(base_prediction.dtype, jnp.float32)

    ts, rows_pad, n_steps = _choose_tiling(B, max_rows_per_tile)
    B_pad = rows_pad * 128

    def to_tile(a):
        flat = a.reshape(-1)
        if B_pad != B:
            flat = jnp.pad(flat, (0, B_pad - B))      # only materialized when misaligned
        return flat.reshape(rows_pad, 128)            # no dtype cast here: cast in-kernel

    region2d = to_tile(region_prediction)
    base2d = to_tile(base_prediction)

    leaf_flat = leaf_values.reshape(-1).astype(jnp.float32)   # (R,) -> SMEM
    err_flat = error_pval.reshape(-1).astype(jnp.float32)     # (R,) -> SMEM

    kernel = functools.partial(_cp_kernel, n_regions=R)
    batch_spec = pl.BlockSpec((ts, 128), lambda i, leaf, err: (i, 0))

    lower2d, upper2d = pl.pallas_call(
        kernel,
        grid_spec=pltpu.PrefetchScalarGridSpec(
            num_scalar_prefetch=2,
            grid=(n_steps,),
            in_specs=[batch_spec, batch_spec],
            out_specs=[batch_spec, batch_spec],
        ),
        out_shape=(
            jax.ShapeDtypeStruct((rows_pad, 128), out_dtype),
            jax.ShapeDtypeStruct((rows_pad, 128), out_dtype),
        ),
        compiler_params=pltpu.CompilerParams(
            dimension_semantics=("parallel",)),       # v7x: shard batch tiles across both TCs
    )(leaf_flat, err_flat, region2d, base2d)

    lower = lower2d.reshape(-1)[:B].reshape(base_prediction.shape)
    upper = upper2d.reshape(-1)[:B].reshape(base_prediction.shape)
    return (x_orig, base_prediction, region_prediction, lower, upper)


# ---------------------------------------------------------------------------
# Demo / smoke test
# ---------------------------------------------------------------------------
def _check(B, F, R, NSCORES, key, quantile=0.9):
    k1, k2, k3, k4 = jax.random.split(key, 4)

    scores_all = np.asarray(jax.random.uniform(k1, (R, NSCORES), jnp.float32))
    conformity_scores_list = [scores_all[r] for r in range(R)]
    leaf_values_np = np.linspace(-1.0, 2.0, R).astype(np.float32)
    error_pval, leaf_values = build_params(conformity_scores_list, leaf_values_np, quantile)

    x_orig = jax.random.normal(k2, (B, F), jnp.float32)
    base_prediction = jax.random.normal(k3, (B, 1), jnp.float32)
    region_prediction = jax.random.normal(k4, (B, 1), jnp.float32)

    out = cp_inference_multi_region(
        x_orig, base_prediction, region_prediction, leaf_values, error_pval
    )
    jax.block_until_ready(out)
    _, _, _, lower, upper = out

    # Reference check in plain numpy (same semantics as the torch forward).
    rp = np.asarray(region_prediction)
    bp = np.asarray(base_prediction)
    membership = np.argmin(np.abs(rp - np.asarray(leaf_values)[None, :]), axis=1)
    ep = np.asarray(error_pval)[membership]            # (B, 1)
    np.testing.assert_allclose(np.asarray(lower), bp - ep, rtol=1e-6, atol=1e-6)
    np.testing.assert_allclose(np.asarray(upper), bp + ep, rtol=1e-6, atol=1e-6)


if __name__ == "__main__":
    key = jax.random.PRNGKey(0)
    k_small, k_big = jax.random.split(key)

    # Small shape consistent with the module's forward: (B, 1) predictions, 4 regions.
    _check(B=8, F=16, R=4, NSCORES=20, key=k_small)
    # Non-tile-aligned batch: exercises padding + multi-step (2-tile) grid.
    _check(B=2500, F=4, R=5, NSCORES=17, key=k_big)

    print("KERNEL_OK")
</pallas_src>

<mosaic_0001>
module attributes {stable_mosaic.version = 11 : i64} {
  func.func @_cp_kernel(%arg0: i32, %arg1: memref<4xf32, #tpu.memory_space<smem>>, %arg2: memref<4xf32, #tpu.memory_space<smem>>, %arg3: memref<8x128xf32, #tpu.memory_space<vmem>>, %arg4: memref<8x128xf32, #tpu.memory_space<vmem>>, %arg5: memref<8x128xf32, #tpu.memory_space<vmem>>, %arg6: memref<8x128xf32, #tpu.memory_space<vmem>>) attributes {dimension_semantics = [#tpu.dimension_semantics<parallel>], iteration_bounds = array<i64: 1>, scalar_prefetch = 2 : i64, scratch_operands = 0 : i64, tpu.core_type = #tpu.core_type<tc>, window_params = [{transform_indices = @transform_0, window_bounds = array<i64: 8, 128>}, {transform_indices = @transform_1, window_bounds = array<i64: 8, 128>}, {transform_indices = @transform_2, window_bounds = array<i64: 8, 128>}, {transform_indices = @transform_3, window_bounds = array<i64: 8, 128>}]} {
    %c0 = arith.constant 0 : index
    %c0_0 = arith.constant 0 : index
    %0 = vector.load %arg3[%c0, %c0_0] : memref<8x128xf32, #tpu.memory_space<vmem>>, vector<8x128xf32>
    %c0_1 = arith.constant 0 : index
    %c0_2 = arith.constant 0 : index
    %1 = vector.load %arg4[%c0_1, %c0_2] : memref<8x128xf32, #tpu.memory_space<vmem>>, vector<8x128xf32>
    %c0_3 = arith.constant 0 : index
    %2 = memref.load %arg1[%c0_3] : memref<4xf32, #tpu.memory_space<smem>>
    %3 = vector.broadcast %2 : f32 to vector<8x128xf32>
    %4 = arith.subf %0, %3 : vector<8x128xf32>
    %5 = math.absf %4 : vector<8x128xf32>
    %6 = arith.cmpf one, %5, %5 : vector<8x128xf32>
    %cst = arith.constant 0xFF800000 : f32
    %7 = vector.broadcast %cst : f32 to vector<8x128xf32>
    %8 = arith.select %6, %7, %5 : vector<8x128xi1>, vector<8x128xf32>
    %c0_4 = arith.constant 0 : index
    %9 = memref.load %arg2[%c0_4] : memref<4xf32, #tpu.memory_space<smem>>
    %10 = vector.broadcast %9 : f32 to vector<8x128xf32>
    %c1 = arith.constant 1 : index
    %11 = memref.load %arg1[%c1] : memref<4xf32, #tpu.memory_space<smem>>
    %c1_5 = arith.constant 1 : index
    %12 = memref.load %arg2[%c1_5] : memref<4xf32, #tpu.memory_space<smem>>
    %13 = vector.broadcast %11 : f32 to vector<8x128xf32>
    %14 = arith.subf %0, %13 : vector<8x128xf32>
    %15 = math.absf %14 : vector<8x128xf32>
    %16 = arith.cmpf one, %15, %15 : vector<8x128xf32>
    %cst_6 = arith.constant 0xFF800000 : f32
    %17 = vector.broadcast %cst_6 : f32 to vector<8x128xf32>
    %18 = arith.select %16, %17, %15 : vector<8x128xi1>, vector<8x128xf32>
    %19 = arith.cmpf olt, %18, %8 : vector<8x128xf32>
    %20 = vector.broadcast %12 : f32 to vector<8x128xf32>
    %21 = arith.select %19, %20, %10 : vector<8x128xi1>, vector<8x128xf32>
    %22 = arith.select %19, %18, %8 : vector<8x128xi1>, vector<8x128xf32>
    %c2 = arith.constant 2 : index
    %23 = memref.load %arg1[%c2] : memref<4xf32, #tpu.memory_space<smem>>
    %c2_7 = arith.constant 2 : index
    %24 = memref.load %arg2[%c2_7] : memref<4xf32, #tpu.memory_space<smem>>
    %25 = vector.broadcast %23 : f32 to vector<8x128xf32>
    %26 = arith.subf %0, %25 : vector<8x128xf32>
    %27 = math.absf %26 : vector<8x128xf32>
    %28 = arith.cmpf one, %27, %27 : vector<8x128xf32>
    %cst_8 = arith.constant 0xFF800000 : f32
    %29 = vector.broadcast %cst_8 : f32 to vector<8x128xf32>
    %30 = arith.select %28, %29, %27 : vector<8x128xi1>, vector<8x128xf32>
    %31 = arith.cmpf olt, %30, %22 : vector<8x128xf32>
    %32 = vector.broadcast %24 : f32 to vector<8x128xf32>
    %33 = arith.select %31, %32, %21 : vector<8x128xi1>, vector<8x128xf32>
    %34 = arith.select %31, %30, %22 : vector<8x128xi1>, vector<8x128xf32>
    %c3 = arith.constant 3 : index
    %35 = memref.load %arg1[%c3] : memref<4xf32, #tpu.memory_space<smem>>
    %c3_9 = arith.constant 3 : index
    %36 = memref.load %arg2[%c3_9] : memref<4xf32, #tpu.memory_space<smem>>
    %37 = vector.broadcast %35 : f32 to vector<8x128xf32>
    %38 = arith.subf %0, %37 : vector<8x128xf32>
    %39 = math.absf %38 : vector<8x128xf32>
    %40 = arith.cmpf one, %39, %39 : vector<8x128xf32>
    %cst_10 = arith.constant 0xFF800000 : f32
    %41 = vector.broadcast %cst_10 : f32 to vector<8x128xf32>
    %42 = arith.select %40, %41, %39 : vector<8x128xi1>, vector<8x128xf32>
    %43 = arith.cmpf olt, %42, %34 : vector<8x128xf32>
    %44 = vector.broadcast %36 : f32 to vector<8x128xf32>
    %45 = arith.select %43, %44, %33 : vector<8x128xi1>, vector<8x128xf32>
    %46 = arith.subf %1, %45 : vector<8x128xf32>
    %c0_11 = arith.constant 0 : index
    %c0_12 = arith.constant 0 : index
    %47 = vector.load %arg5[%c0_11, %c0_12] : memref<8x128xf32, #tpu.memory_space<vmem>>, vector<8x128xf32>
    tpu.vector_store %arg5[%c0_11, %c0_12], %46 {strides = array<i32>} : memref<8x128xf32, #tpu.memory_space<vmem>>, vector<8x128xf32>,
    %48 = arith.addf %1, %45 : vector<8x128xf32>
    %c0_13 = arith.constant 0 : index
    %c0_14 = arith.constant 0 : index
    %49 = vector.load %arg6[%c0_13, %c0_14] : memref<8x128xf32, #tpu.memory_space<vmem>>, vector<8x128xf32>
    tpu.vector_store %arg6[%c0_13, %c0_14], %48 {strides = array<i32>} : memref<8x128xf32, #tpu.memory_space<vmem>>, vector<8x128xf32>,
    return
  }
  func.func @transform_0(%arg0: i32, %arg1: memref<4xf32, #tpu.memory_space<smem>>, %arg2: memref<4xf32, #tpu.memory_space<smem>>) -> (i32, i32) {
    %c0_i32 = arith.constant 0 : i32
    %c0_i32_0 = arith.constant 0 : i32
    return %arg0, %c0_i32 : i32, i32
  }
  func.func @transform_1(%arg0: i32, %arg1: memref<4xf32, #tpu.memory_space<smem>>, %arg2: memref<4xf32, #tpu.memory_space<smem>>) -> (i32, i32) {
    %c0_i32 = arith.constant 0 : i32
    %c0_i32_0 = arith.constant 0 : i32
    return %arg0, %c0_i32 : i32, i32
  }
  func.func @transform_2(%arg0: i32, %arg1: memref<4xf32, #tpu.memory_space<smem>>, %arg2: memref<4xf32, #tpu.memory_space<smem>>) -> (i32, i32) {
    %c0_i32 = arith.constant 0 : i32
    %c0_i32_0 = arith.constant 0 : i32
    return %arg0, %c0_i32 : i32, i32
  }
  func.func @transform_3(%arg0: i32, %arg1: memref<4xf32, #tpu.memory_space<smem>>, %arg2: memref<4xf32, #tpu.memory_space<smem>>) -> (i32, i32) {
    %c0_i32 = arith.constant 0 : i32
    %c0_i32_0 = arith.constant 0 : i32
    return %arg0, %c0_i32 : i32, i32
  }
}

</mosaic_0001>

<bundles_post_ra>
// kernel: tpu_custom_call.1
= control target key start
LH: loop header
LB: loop body
LE: loop exit
PB: predicated region body
PF: predicated region fallthrough
CT: control target
= control target key end

     0   :  { %s314_s0 = inlined_call_operand.hbm [shape: f32[4], index: 0, kind: input, shape index: {}]   ;;  %s315_s2 = inlined_call_operand.hbm [shape: f32[8,128], index: 2, kind: input, shape index: {}]   ;;  %s316_s3 = inlined_call_operand.vmem [shape: f32[8,128], index: 3, kind: input, shape index: {}]   ;;  %s317_s4 = inlined_call_operand.hbm [shape: f32[8,128], index: 4, kind: output, shape index: {0}]   ;;  %s318_s5 = inlined_call_operand.hbm [shape: f32[8,128], index: 5, kind: output, shape index: {1}]   ;;  %s319_s1 = inlined_call_operand.vmem [shape: f32[4], index: 1, kind: input, shape index: {}]  }
   0x1   :  { %s123_s20 = scalar_lea.hbm %s314_s0, 16 }
   0x2   :  { %p124_p0 = scmp.ne.s32.totalorder %s314_s0, %s123_s20  ;;  %p127_p1 = scmp.lt.u32.totalorder %s123_s20, %s314_s0 }
   0x4   :  { %p129_p2 = pnand %p127_p1, %p124_p0 }
   0x6   :  { %132 = shalt.err (!%p129_p2)  }
   0x7   :  { %s219_s25 = smov [#allocation3]   ;;  %s13_s30 = sshll.u32 %s319_s1, 4  ;;  %s14_s30 = int_to_ptr.vmem [resolvable:$true] %s13_s30 }
   0x8   :  { %12 = dma.hbm_to_smem %s314_s0, 16, %s219_s25, [#allocation2] }
   0x9   :  { %s133_s6 = scalar_lea.vmem %s14_s30, 16  ;;  %p138_p4 = scmp.lt.s32.totalorder %s14_s30, %s14_s30 }
   0xa   :  { %p134_p3 = scmp.ne.s32.totalorder %s14_s30, %s133_s6  ;;  %p139_p5 = scmp.lt.s32.totalorder %s133_s6, %s133_s6 }
   0xc   :  { %p140_p6 = por %p139_p5, %p138_p4 }
   0xe   :  { %p141_p7 = pnand %p140_p6, %p134_p3 }
  0x10   :  { %144 = shalt.err (!%p141_p7)  }
  0x11   :  { %s220_s7 = smov [#allocation4]  }
  0x12   :  { %16 = dma.vmem_to_smem %s14_s30, 16, %s220_s7, [#allocation2] }
  0x13   :  { %211 = dma.done.wait [#allocation2], 32 }
  0x14   :  { %212 = vsyncadd [#allocation2], 4294967264 }
  0x15   :  { %18 = sfence }
  0x16   :  { %19 = vsyncpa [#allocation6], 0 }
  0x17   :  { %20 = vsyncpa [#allocation7], 0 }
  0x18   :  { %21 = vsyncpa [#allocation10], 0  ;;  %s221_s0 = smov [#allocation5]   ;;  %s145_s10 = scalar_lea.hbm %s315_s2, 128 }
  0x19   :  { %s28_s8 = sshll.u32 %s221_s0, 4  ;;  %p146_p8 = scmp.ne.s32.totalorder %s315_s2, %s145_s10  ;;  %s29_s8 = int_to_ptr.vmem [resolvable:$true] %s28_s8 }
  0x1a   :  { %p149_p9 = scmp.lt.u32.totalorder %s145_s10, %s315_s2 }
  0x1c   :  { %p151_p10 = pnand %p149_p9, %p146_p8 }
  0x1e   :  { %154 = shalt.err (!%p151_p10)
}
  0x1f   :  { %s155_s15 = scalar_lea.vmem %s29_s8, 128  ;;  %p160_p12 = scmp.lt.s32.totalorder %s29_s8, %s29_s8 }
  0x20   :  { %p156_p11 = scmp.ne.s32.totalorder %s29_s8, %s155_s15  ;;  %p161_p13 = scmp.lt.s32.totalorder %s155_s15, %s155_s15 }
  0x22   :  { %p162_p0 = por %p161_p13, %p160_p12 }
  0x24   :  { %p163_p1 = pnand %p162_p0, %p156_p11 }
  0x26   :  { %166 = shalt.err (!%p163_p1)
}
  0x27   :  { %31 = dma.hbm_to_vmem [thread:$0]  %s315_s2, 128, %s29_s8, [#allocation6]  }
  0x28   :  { %213 = dma.done.wait [#allocation6], 128  }
  0x29   :  { %214 = vsyncadd [#allocation6], 4294967168  ;;  %s39_s18 = sld [smem:[#allocation3]]  ;;  %s112_s19 = sld [smem:[#allocation3 + $0x1]]  ;;  %v37_v0 = vld [vmem:[#allocation5] sm:$0xff]  ;;  %v38_v23 = vld [vmem:[%s316_s3] sm:$0xff] }
  0x2a   :  { %s114_s20 = sld [smem:[#allocation3 + $0x2]]  ;;  %s45_s21 = sld [smem:[#allocation4]] }
  0x2b   :  { %s116_s22 = sld [smem:[#allocation3 + $0x3]]  ;;  %s113_s23 = sld [smem:[#allocation4 + $0x1]] }
  0x2c   :  { %s281_s24 = sld [smem:[#allocation4 + $0x2]]  ;;  %s283_s25 = sld [smem:[#allocation4 + $0x3]] }
  0x2d   :  { %s222_s27 = smov [#allocation8]   ;;  %s223_s29 = smov [#allocation9]  }
  0x2e   :  { %s89_s28 = sshll.u32 %s222_s27, 4  ;;  %s99_s30 = sshll.u32 %s223_s29, 4  ;;  %s90_s28 = int_to_ptr.vmem [resolvable:$true] %s89_s28  ;;  %s100_s30 = int_to_ptr.vmem [resolvable:$true] %s99_s30 }
  0x2f   :  { %v40_v1 = vstv %s39_s18  ;;  %v49_v3 = vstv %s112_s19  ;;  %s167_s6 = scalar_lea.vmem %s90_s28, 128  ;;  %p172_p3 = scmp.lt.s32.totalorder %s90_s28, %s90_s28 }
  0x30   :  { %v41_v2 = vsub.f32 %v37_v0, %v40_v1  ;;  %v50_v4 = vsub.f32 %v37_v0, %v49_v3  ;;  %v60_v5 = vstv %s114_s20  ;;  %v46_v11 = vstv %s45_s21  ;;  %p168_p2 = scmp.ne.s32.totalorder %s90_s28, %s167_s6  ;;  %p173_p4 = scmp.lt.s32.totalorder %s167_s6, %s167_s6 }
  0x31   :  { %v61_v7 = vsub.f32 %v37_v0, %v60_v5  ;;  %v71_v8 = vstv %s116_s22  ;;  %v55_v14 = vstv %s113_s23 }
  0x32   :  { %v42_v6 = vand.u32 2147483647, %v41_v2  ;;  %v51_v9 = vand.u32 2147483647, %v50_v4  ;;  %v72_v10 = vsub.f32 %v37_v0, %v71_v8  ;;  %v66_v18 = vstv %s281_s24  ;;  %p174_p5 = por %p173_p4, %p172_p3 }
  0x33   :  { %v62_v12 = vand.u32 2147483647, %v61_v7  ;;  %v77_v22 = vstv %s283_s25 }
  0x34   :  { %vm43_vm0 = vcmp.ne.f32.partialorder %v42_v6, %v42_v6  ;;  %vm52_vm1 = vcmp.ne.f32.partialorder %v51_v9, %v51_v9  ;;  %v73_v15 = vand.u32 2147483647, %v72_v10  ;;  %p175_p6 = pnand %p174_p5, %p168_p2 }
  0x35   :  { %v44_v13 = vsel %vm43_vm0, -inf, %v42_v6  ;;  %v53_v16 = vsel %vm52_vm1, -inf, %v51_v9  ;;  %vm63_vm2 = vcmp.ne.f32.partialorder %v62_v12, %v62_v12 }
  0x36   :  { %vm54_vm3 = vcmp.lt.f32.partialorder %v53_v16, %v44_v13  ;;  %v64_v17 = vsel %vm63_vm2, -inf, %v62_v12  ;;  %vm74_vm4 = vcmp.ne.f32.partialorder %v73_v15, %v73_v15 }
  0x37   :  { %v56_v19 = vsel %vm54_vm3, %v55_v14, %v46_v11  ;;  %v57_v20 = vsel %vm54_vm3, %v53_v16, %v44_v13  ;;  %v75_v21 = vsel %vm74_vm4, -inf, %v73_v15 }
  0x38   :  { %vm65_vm5 = vcmp.lt.f32.partialorder %v64_v17, %v57_v20 }
  0x39   :  { %v67_v24 = vsel %vm65_vm5, %v66_v18, %v56_v19  ;;  %v68_v25 = vsel %vm65_vm5, %v64_v17, %v57_v20 }
  0x3a   :  { %vm76_vm6 = vcmp.lt.f32.partialorder %v75_v21, %v68_v25 }
  0x3b   :  { %v78_v26 = vsel %vm76_vm6, %v77_v22, %v67_v24 }
  0x3c   :  { %v79_v27 = vsub.f32 %v38_v23, %v78_v26  ;;  %v81_v28 = vadd.f32 %v78_v26, %v38_v23 }
  0x3e   :  { %80 = vst [vmem:[#allocation8] sm:$0xff] %v79_v27  ;;  %82 = vst [vmem:[#allocation9] sm:$0xff] %v81_v28 }
  0x3f   :  { %178 = shalt.err (!%p175_p6)
}
  0x40   :  { %s179_s0 = scalar_lea.hbm %s317_s4, 128 }
  0x41   :  { %p180_p7 = scmp.ne.s32.totalorder %s317_s4, %s179_s0  ;;  %p183_p8 = scmp.lt.u32.totalorder %s179_s0, %s317_s4 }
  0x43   :  { %p185_p9 = pnand %p183_p8, %p180_p7 }
  0x45   :  { %188 = shalt.err (!%p185_p9)
}
  0x46   :  { %92 = dma.vmem_to_hbm [thread:$0]  %s90_s28, 128, %s317_s4, [#allocation7]  }
  0x47   :  { %s189_s13 = scalar_lea.vmem %s100_s30, 128  ;;  %p194_p11 = scmp.lt.s32.totalorder %s100_s30, %s100_s30 }
  0x48   :  { %p190_p10 = scmp.ne.s32.totalorder %s100_s30, %s189_s13  ;;  %p195_p12 = scmp.lt.s32.totalorder %s189_s13, %s189_s13 }
  0x4a   :  { %p196_p13 = por %p195_p12, %p194_p11 }
  0x4c   :  { %p197_p0 = pnand %p196_p13, %p190_p10 }
  0x4e   :  { %200 = shalt.err (!%p197_p0)
}
  0x4f   :  { %s201_s16 = scalar_lea.hbm %s318_s5, 128 }
  0x50   :  { %p202_p1 = scmp.ne.s32.totalorder %s318_s5, %s201_s16  ;;  %p205_p2 = scmp.lt.u32.totalorder %s201_s16, %s318_s5 }
  0x52   :  { %p207_p3 = pnand %p205_p2, %p202_p1 }
  0x54   :  { %210 = shalt.err (!%p207_p3)
}
  0x55   :  { %102 = dma.vmem_to_hbm [thread:$0]  %s100_s30, 128, %s318_s5, [#allocation10]  }
  0x56   :  { %215 = dma.done.wait [#allocation7], 128  }
  0x57   :  { %216 = vsyncadd [#allocation7], 4294967168 }
  0x58   :  { %217 = dma.done.wait [#allocation10], 128  }
  0x59   :  { %218 = vsyncadd [#allocation10], 4294967168 }
  0x5a   :  { %109 = vsyncpa [#allocation6], 1 }
  0x5b   :  { %110 = vsyncpa [#allocation7], 1 }
  0x5c   :  { %111 = vsyncpa [#allocation10], 1 }

</bundles_post_ra>
